<compile_context>
chip_gen: v5e
topology: v5e:2x2
jax: 0.10.0
libtpu: 0.0.40
codegen_flags: <defaults>
</compile_context>

<pallas_src>
import functools
import math

import jax
import jax.numpy as jnp
from jax.experimental import pallas as pl
from jax.experimental.pallas import tpu as pltpu

_NEG_BIG = -1e30
_VMEM_LIMIT = 48 * 1024 * 1024  # < v7x's 64 MiB physical VMEM


def _round_up(x, m):
    return ((x + m - 1) // m) * m


def _fit_tile(dim, target, align):
    """Pick a tile <= target (target is align-multiple); small dims round up to align."""
    if dim >= target:
        return target
    return _round_up(dim, align)


# -----------------------------------------------------------------------------
# Tiled fused linear kernel: y = act(x @ w + b)
# -----------------------------------------------------------------------------
def _linear_kernel(x_ref, w_ref, b_ref, o_ref, acc_ref, *, activation):
    k = pl.program_id(2)

    @pl.when(k == 0)
    def _():
        acc_ref[...] = jnp.zeros_like(acc_ref)

    acc_ref[...] += jnp.dot(
        x_ref[...], w_ref[...], preferred_element_type=jnp.float32
    )

    @pl.when(k == pl.num_programs(2) - 1)
    def _():
        acc = acc_ref[...] + b_ref[...]            # f32 epilogue math
        if activation == "silu":
            acc = acc * (1.0 / (1.0 + jnp.exp(-acc)))
        elif activation == "gelu_tanh":
            acc = 0.5 * acc * (
                1.0 + jnp.tanh(0.7978845608028654 * (acc + 0.044715 * acc * acc * acc))
            )
        o_ref[...] = acc.astype(o_ref.dtype)


def pallas_linear(x, w, b, activation=None, out_dtype=jnp.bfloat16,
                  tm=256, tn=256, tk=512):
    """y = act(x @ w + b).  x: (..., K), w: (K, N), b: (N,).  bf16 in, f32 acc."""
    orig_shape = x.shape
    K = int(orig_shape[-1])
    M = 1
    for d in orig_shape[:-1]:
        M *= int(d)
    N = int(w.shape[1])

    tm = _fit_tile(M, tm, 8)
    tn = _fit_tile(N, tn, 128)
    tk = _fit_tile(K, tk, 128)
    Mp, Np, Kp = _round_up(M, tm), _round_up(N, tn), _round_up(K, tk)

    x2 = x.reshape(M, K).astype(jnp.bfloat16)
    w2 = w.astype(jnp.bfloat16)
    b2 = b.reshape(1, N).astype(jnp.float32)
    if (Mp, Kp) != (M, K):
        x2 = jnp.pad(x2, ((0, Mp - M), (0, Kp - K)))
    if (Kp, Np) != (K, N):
        w2 = jnp.pad(w2, ((0, Kp - K), (0, Np - N)))
    if Np != N:
        b2 = jnp.pad(b2, ((0, 0), (0, Np - N)))

    out = pl.pallas_call(
        functools.partial(_linear_kernel, activation=activation),
        out_shape=jax.ShapeDtypeStruct((Mp, Np), out_dtype),
        grid=(Mp // tm, Np // tn, Kp // tk),
        in_specs=[
            pl.BlockSpec((tm, tk), lambda i, j, k: (i, k)),
            pl.BlockSpec((tk, tn), lambda i, j, k: (k, j)),
            pl.BlockSpec((1, tn), lambda i, j, k: (0, j)),
        ],
        out_specs=pl.BlockSpec((tm, tn), lambda i, j, k: (i, j)),
        scratch_shapes=[pltpu.VMEM((tm, tn), jnp.float32)],
        compiler_params=pltpu.CompilerParams(
            dimension_semantics=("parallel", "parallel", "arbitrary"),
            vmem_limit_bytes=_VMEM_LIMIT,
        ),
    )(x2, w2, b2)
    out = out[:M, :N]
    return out.reshape(*orig_shape[:-1], N)


# -----------------------------------------------------------------------------
# Flash-attention kernel: all heads per grid step, lane-dense (B, L, H*D) output
# -----------------------------------------------------------------------------
def _flash_attn_kernel(q_ref, k_ref, v_ref, o_ref, m_sc, l_sc, acc_sc, *,
                       num_heads, t_kv, seq_len, kv_padded):
    kv = pl.program_id(2)

    @pl.when(kv == 0)
    def _():
        m_sc[...] = jnp.full(m_sc.shape, _NEG_BIG, m_sc.dtype)
        l_sc[...] = jnp.zeros_like(l_sc)
        acc_sc[...] = jnp.zeros_like(acc_sc)

    q = q_ref[0]   # (H, tq, D)  bf16, pre-scaled by 1/sqrt(D)
    k = k_ref[0]   # (H, tk, D)
    v = v_ref[0]   # (H, tk, D)

    # Contract on the last axis (no k.T materialization); f32 scores.
    s = jnp.einsum("hqd,hkd->hqk", q, k, preferred_element_type=jnp.float32)
    if kv_padded:
        col = jax.lax.broadcasted_iota(jnp.int32, s.shape, 2) + kv * t_kv
        s = jnp.where(col < seq_len, s, _NEG_BIG)

    m_prev = m_sc[...]
    m_new = jnp.maximum(m_prev, jnp.max(s, axis=-1, keepdims=True))
    alpha = jnp.exp(m_prev - m_new)
    p = jnp.exp(s - m_new)
    l_sc[...] = alpha * l_sc[...] + jnp.sum(p, axis=-1, keepdims=True)
    acc_sc[...] = alpha * acc_sc[...] + jnp.einsum(
        "hqk,hkd->hqd", p.astype(v.dtype), v, preferred_element_type=jnp.float32
    )
    m_sc[...] = m_new

    @pl.when(kv == pl.num_programs(2) - 1)
    def _():
        inv = pl.reciprocal(l_sc[...], approx=True)     # (H, tq, 1), EUP
        out = acc_sc[...] * inv                          # (H, tq, D) f32
        o_ref[0] = jnp.concatenate(
            [out[h] for h in range(num_heads)], axis=-1
        ).astype(o_ref.dtype)


def pallas_attention(q, k, v, tq=256, tkv=256):
    """q,k,v: (B, H, L, D) -> (B, L, H*D).  Online-softmax attention."""
    B, H, L, D = q.shape
    scale = 1.0 / math.sqrt(D)

    tq = _fit_tile(L, tq, 8)
    tkv = _fit_tile(L, tkv, 8)
    Lq = _round_up(L, tq)
    Lk = _round_up(L, tkv)

    qf = (q.astype(jnp.float32) * scale).astype(jnp.bfloat16)
    kf = k.astype(jnp.bfloat16)
    vf = v.astype(jnp.bfloat16)
    if Lq != L:
        qf = jnp.pad(qf, ((0, 0), (0, 0), (0, Lq - L), (0, 0)))
    if Lk != L:
        kf = jnp.pad(kf, ((0, 0), (0, 0), (0, Lk - L), (0, 0)))
        vf = jnp.pad(vf, ((0, 0), (0, 0), (0, Lk - L), (0, 0)))

    out = pl.pallas_call(
        functools.partial(
            _flash_attn_kernel,
            num_heads=H, t_kv=tkv, seq_len=L, kv_padded=(Lk != L),
        ),
        out_shape=jax.ShapeDtypeStruct((B, Lq, H * D), jnp.bfloat16),
        grid=(B, Lq // tq, Lk // tkv),
        in_specs=[
            pl.BlockSpec((1, H, tq, D), lambda b, i, j: (b, 0, i, 0)),
            pl.BlockSpec((1, H, tkv, D), lambda b, i, j: (b, 0, j, 0)),
            pl.BlockSpec((1, H, tkv, D), lambda b, i, j: (b, 0, j, 0)),
        ],
        out_specs=pl.BlockSpec((1, tq, H * D), lambda b, i, j: (b, i, 0)),
        scratch_shapes=[
            pltpu.VMEM((H, tq, 1), jnp.float32),   # m
            pltpu.VMEM((H, tq, 1), jnp.float32),   # l
            pltpu.VMEM((H, tq, D), jnp.float32),   # acc
        ],
        compiler_params=pltpu.CompilerParams(
            dimension_semantics=("parallel", "parallel", "arbitrary"),
            vmem_limit_bytes=_VMEM_LIMIT,
        ),
    )(qf, kf, vf)
    if Lq != L:
        out = out[:, :L, :]
    return out


# -----------------------------------------------------------------------------
# Plain-JAX glue (small elementwise / layout ops)
# -----------------------------------------------------------------------------
def silu(x):
    return x * jax.nn.sigmoid(x)


def gelu_tanh(x):
    return 0.5 * x * (1.0 + jnp.tanh(0.7978845608028654 * (x + 0.044715 * x * x * x)))


def dyt(x, p):
    # DynamicTanh replacing LayerNorm (see TODO(synk) above).
    return jnp.tanh(p["alpha"] * x) * p["w"] + p["b"]


def rms_norm(x, scale):
    xf = x.astype(jnp.float32)
    rrms = jax.lax.rsqrt(jnp.mean(xf * xf, axis=-1, keepdims=True) + 1e-6)
    return (xf * rrms) * scale


def timestep_embedding(t, dim, max_period=10000, time_factor=1000.0):
    t = time_factor * t.astype(jnp.float32)
    half = dim // 2
    freqs = jnp.exp(
        -math.log(max_period) * jnp.arange(half, dtype=jnp.float32) / half
    )
    args = t[:, None] * freqs[None, :]
    return jnp.concatenate([jnp.cos(args), jnp.sin(args)], axis=-1)


def rope(pos, dim, theta):
    # pos: (B, L) -> (B, L, dim//2, 2, 2)
    scale = jnp.arange(0, dim, 2, dtype=jnp.float32) / dim
    omega = 1.0 / (theta ** scale)
    out = jnp.einsum("...n,d->...nd", pos.astype(jnp.float32), omega)
    out = jnp.stack(
        [jnp.cos(out), -jnp.sin(out), jnp.sin(out), jnp.cos(out)], axis=-1
    )
    return out.reshape(*out.shape[:-1], 2, 2)


def embed_nd(ids, axes_dim, theta):
    # ids: (B, L, n_axes) -> pe: (B, 1, L, sum(axes_dim)//2, 2, 2)
    emb = jnp.concatenate(
        [rope(ids[..., i], axes_dim[i], theta) for i in range(ids.shape[-1])],
        axis=-3,
    )
    return emb[:, None]


def apply_rope(xq, xk, freqs_cis):
    xq_ = xq.reshape(*xq.shape[:-1], -1, 1, 2)
    xk_ = xk.reshape(*xk.shape[:-1], -1, 1, 2)
    xq_out = freqs_cis[..., 0] * xq_[..., 0] + freqs_cis[..., 1] * xq_[..., 1]
    xk_out = freqs_cis[..., 0] * xk_[..., 0] + freqs_cis[..., 1] * xk_[..., 1]
    return xq_out.reshape(xq.shape), xk_out.reshape(xk.shape)


def split_qkv(qkv, num_heads):
    # (B, L, 3*H*D) -> 3 x (B, H, L, D)
    B, L, F = qkv.shape
    D = F // (3 * num_heads)
    qkv = qkv.reshape(B, L, 3, num_heads, D).transpose(2, 0, 3, 1, 4)
    return qkv[0], qkv[1], qkv[2]


def modulation(p, vec_act, n_chunks):
    # vec_act = silu(vec), shared between the two streams of a double block.
    out = pallas_linear(vec_act, p["w"], p["b"])[:, None, :]
    return jnp.split(out, n_chunks, axis=-1)


def mlp_embedder(p, x):
    h = pallas_linear(x, p["in"]["w"], p["in"]["b"], activation="silu")
    return pallas_linear(h, p["out"]["w"], p["out"]["b"])


# -----------------------------------------------------------------------------
# Blocks
# -----------------------------------------------------------------------------
# TODO(synk): the DyT+modulation prologue and gate*out+residual epilogue are
# left in XLA; fusing them into the matmul kernels needs per-batch scale/shift
# indexing inside the tile and is a further bandwidth optimization.
def double_block(p, img, txt, vec, pe, num_heads):
    Lt = txt.shape[1]
    vec_act = silu(vec)

    im_s1, im_sc1, im_g1, im_s2, im_sc2, im_g2 = modulation(p["img_mod"], vec_act, 6)
    tx_s1, tx_sc1, tx_g1, tx_s2, tx_sc2, tx_g2 = modulation(p["txt_mod"], vec_act, 6)

    img_mod = (1.0 + im_sc1) * dyt(img, p["img_norm1"]) + im_s1
    img_qkv = pallas_linear(img_mod, p["img_qkv"]["w"], p["img_qkv"]["b"])
    img_q, img_k, img_v = split_qkv(img_qkv, num_heads)
    img_q = rms_norm(img_q, p["img_q_scale"])
    img_k = rms_norm(img_k, p["img_k_scale"])

    txt_mod = (1.0 + tx_sc1) * dyt(txt, p["txt_norm1"]) + tx_s1
    txt_qkv = pallas_linear(txt_mod, p["txt_qkv"]["w"], p["txt_qkv"]["b"])
    txt_q, txt_k, txt_v = split_qkv(txt_qkv, num_heads)
    txt_q = rms_norm(txt_q, p["txt_q_scale"])
    txt_k = rms_norm(txt_k, p["txt_k_scale"])

    q = jnp.concatenate([txt_q, img_q], axis=2)
    k = jnp.concatenate([txt_k, img_k], axis=2)
    v = jnp.concatenate([txt_v, img_v], axis=2)
    q, k = apply_rope(q, k, pe)
    attn = pallas_attention(q, k, v)
    txt_attn, img_attn = attn[:, :Lt], attn[:, Lt:]

    img = img + im_g1 * pallas_linear(img_attn, p["img_proj"]["w"], p["img_proj"]["b"])
    img_mlp_in = (1.0 + im_sc2) * dyt(img, p["img_norm2"]) + im_s2
    img_hidden = pallas_linear(
        img_mlp_in, p["img_mlp0"]["w"], p["img_mlp0"]["b"], activation="gelu_tanh"
    )
    img = img + im_g2 * pallas_linear(img_hidden, p["img_mlp2"]["w"], p["img_mlp2"]["b"])

    txt = txt + tx_g1 * pallas_linear(txt_attn, p["txt_proj"]["w"], p["txt_proj"]["b"])
    txt_mlp_in = (1.0 + tx_sc2) * dyt(txt, p["txt_norm2"]) + tx_s2
    txt_hidden = pallas_linear(
        txt_mlp_in, p["txt_mlp0"]["w"], p["txt_mlp0"]["b"], activation="gelu_tanh"
    )
    txt = txt + tx_g2 * pallas_linear(txt_hidden, p["txt_mlp2"]["w"], p["txt_mlp2"]["b"])
    return img, txt


def single_block(p, x, vec, pe, num_heads):
    hidden = x.shape[-1]
    shift, scale, gate = modulation(p["mod"], silu(vec), 3)
    x_mod = (1.0 + scale) * dyt(x, p["pre_norm"]) + shift
    lin1 = pallas_linear(x_mod, p["linear1"]["w"], p["linear1"]["b"])
    qkv, mlp = lin1[..., : 3 * hidden], lin1[..., 3 * hidden :]
    q, k, v = split_qkv(qkv, num_heads)
    q = rms_norm(q, p["q_scale"])
    k = rms_norm(k, p["k_scale"])
    q, k = apply_rope(q, k, pe)
    attn = pallas_attention(q, k, v)
    out = pallas_linear(
        jnp.concatenate([attn, gelu_tanh(mlp)], axis=2),
        p["linear2"]["w"],
        p["linear2"]["b"],
    )
    return x + gate * out


def last_layer(p, x, vec):
    mod = pallas_linear(silu(vec), p["ada"]["w"], p["ada"]["b"])
    shift, scale = jnp.split(mod, 2, axis=1)
    x = (1.0 + scale[:, None, :]) * dyt(x, p["norm_final"]) + shift[:, None, :]
    return pallas_linear(x, p["lin"]["w"], p["lin"]["b"], out_dtype=jnp.float32)


# -----------------------------------------------------------------------------
# Full forward
# -----------------------------------------------------------------------------
def flux_forward(params, cfg, x, context):
    B, C, H, W = x.shape
    ph = pw = cfg["patch_size"]
    h, w = H // ph, W // pw

    # patchify: b c (h ph) (w pw) -> b (h w) (c ph pw)
    img = (
        x.reshape(B, C, h, ph, w, pw)
        .transpose(0, 2, 4, 1, 3, 5)
        .reshape(B, h * w, C * ph * pw)
    )

    img_ids = jnp.zeros((h, w, 3), jnp.float32)
    img_ids = img_ids.at[..., 1].add(jnp.arange(h, dtype=jnp.float32)[:, None])
    img_ids = img_ids.at[..., 2].add(jnp.arange(w, dtype=jnp.float32)[None, :])
    img_ids = jnp.broadcast_to(img_ids.reshape(1, h * w, 3), (B, h * w, 3))

    txt = context["t5_text_embeddings"]
    txt_ids = jnp.zeros((B, txt.shape[1], 3), jnp.float32)
    y = context["clip_text_embeddings"]
    timesteps = context["timestep"]

    img = pallas_linear(img, params["img_in"]["w"], params["img_in"]["b"])
    vec = mlp_embedder(params["time_in"], timestep_embedding(timesteps, 256))
    # guidance_embed=False for this config
    vec = vec + mlp_embedder(params["vector_in"], y)
    txt = pallas_linear(txt, params["txt_in"]["w"], params["txt_in"]["b"])

    ids = jnp.concatenate([txt_ids, img_ids], axis=1)
    pe = embed_nd(ids, cfg["axes_dim"], cfg["theta"])

    for blk in params["double_blocks"]:
        img, txt = double_block(blk, img, txt, vec, pe, cfg["num_heads"])

    x_seq = jnp.concatenate([txt, img], axis=1)
    for blk in params["single_blocks"]:
        x_seq = single_block(blk, x_seq, vec, pe, cfg["num_heads"])
    img = x_seq[:, txt.shape[1] :, :]

    img = last_layer(params["final_layer"], img, vec)

    # unpatchify: b (h w) (c ph pw) -> b c (h ph) (w pw)
    out = (
        img.reshape(B, h, w, C, ph, pw)
        .transpose(0, 3, 1, 4, 2, 5)
        .reshape(B, C, H, W)
    )
    return out


# -----------------------------------------------------------------------------
# Deterministic parameter init (synthetic weights)
# -----------------------------------------------------------------------------
def init_params(key, cfg):
    hidden = cfg["hidden_size"]
    heads = cfg["num_heads"]
    head_dim = hidden // heads
    mlp_hidden = int(hidden * cfg["mlp_ratio"])
    keys = iter(jax.random.split(key, 512))

    def lin(in_d, out_d):
        return {
            "w": jax.random.normal(next(keys), (in_d, out_d), jnp.float32) * 0.02,
            "b": jnp.zeros((out_d,), jnp.float32),
        }

    def dyt_p():
        return {
            "alpha": jnp.float32(0.5),
            "w": jnp.ones((hidden,), jnp.float32),
            "b": jnp.zeros((hidden,), jnp.float32),
        }

    params = {
        "img_in": lin(cfg["in_channels"], hidden),
        "txt_in": lin(cfg["context_in_dim"], hidden),
        "time_in": {"in": lin(256, hidden), "out": lin(hidden, hidden)},
        "vector_in": {"in": lin(cfg["vec_in_dim"], hidden), "out": lin(hidden, hidden)},
        "double_blocks": [],
        "single_blocks": [],
        "final_layer": {
            "ada": lin(hidden, 2 * hidden),
            "lin": lin(hidden, cfg["in_channels"]),  # LastLayer(hidden, 1, out_channels)
            "norm_final": dyt_p(),
        },
    }
    for _ in range(cfg["depth"]):
        params["double_blocks"].append(
            {
                "img_mod": lin(hidden, 6 * hidden),
                "txt_mod": lin(hidden, 6 * hidden),
                "img_qkv": lin(hidden, 3 * hidden),
                "txt_qkv": lin(hidden, 3 * hidden),
                "img_q_scale": jnp.ones((head_dim,), jnp.float32),
                "img_k_scale": jnp.ones((head_dim,), jnp.float32),
                "txt_q_scale": jnp.ones((head_dim,), jnp.float32),
                "txt_k_scale": jnp.ones((head_dim,), jnp.float32),
                "img_proj": lin(hidden, hidden),
                "txt_proj": lin(hidden, hidden),
                "img_mlp0": lin(hidden, mlp_hidden),
                "img_mlp2": lin(mlp_hidden, hidden),
                "txt_mlp0": lin(hidden, mlp_hidden),
                "txt_mlp2": lin(mlp_hidden, hidden),
                "img_norm1": dyt_p(),
                "img_norm2": dyt_p(),
                "txt_norm1": dyt_p(),
                "txt_norm2": dyt_p(),
            }
        )
    for _ in range(cfg["depth_single_blocks"]):
        params["single_blocks"].append(
            {
                "mod": lin(hidden, 3 * hidden),
                "linear1": lin(hidden, 3 * hidden + mlp_hidden),
                "linear2": lin(hidden + mlp_hidden, hidden),
                "q_scale": jnp.ones((head_dim,), jnp.float32),
                "k_scale": jnp.ones((head_dim,), jnp.float32),
                "pre_norm": dyt_p(),
            }
        )
    return params


# -----------------------------------------------------------------------------
if __name__ == "__main__":
    cfg = dict(
        in_channels=16,        # = C * patch_size^2 = 4 * 2 * 2
        vec_in_dim=16,
        context_in_dim=32,
        hidden_size=64,
        mlp_ratio=4.0,
        num_heads=2,
        depth=1,
        depth_single_blocks=1,
        axes_dim=[8, 12, 12],  # sum = hidden_size / num_heads = 32
        theta=10000,
        qkv_bias=True,
        guidance_embed=False,
        patch_size=2,
    )

    root = jax.random.PRNGKey(0)
    k_param, k_x, k_txt, k_y, k_t = jax.random.split(root, 5)

    params = init_params(k_param, cfg)

    B = 2
    x = jax.random.normal(k_x, (B, 4, 16, 16), jnp.float32)  # NCHW
    context = {
        "t5_text_embeddings": jax.random.normal(k_txt, (B, 8, cfg["context_in_dim"]), jnp.float32),
        "clip_text_embeddings": jax.random.normal(k_y, (B, cfg["vec_in_dim"]), jnp.float32),
        "timestep": jax.random.uniform(k_t, (B,), jnp.float32),
    }

    out = flux_forward(params, cfg, x, context)
    out = jax.block_until_ready(out)
    assert out.shape == x.shape, (out.shape, x.shape)
    assert bool(jnp.all(jnp.isfinite(out)))
    print("KERNEL_OK")
</pallas_src>

<mosaic_0001>
module attributes {stable_mosaic.version = 11 : i64} {
  func.func @_linear_kernel(%arg0: i32, %arg1: i32, %arg2: i32, %arg3: memref<128x128xbf16, #tpu.memory_space<vmem>>, %arg4: memref<128x128xbf16, #tpu.memory_space<vmem>>, %arg5: memref<1x128xf32, #tpu.memory_space<vmem>>, %arg6: memref<128x128xbf16, #tpu.memory_space<vmem>>, %arg7: memref<128x128xf32, #tpu.memory_space<vmem>>) attributes {dimension_semantics = [#tpu.dimension_semantics<parallel>, #tpu.dimension_semantics<parallel>, #tpu.dimension_semantics<arbitrary>], iteration_bounds = array<i64: 1, 1, 1>, scalar_prefetch = 0 : i64, scratch_operands = 1 : i64, tpu.core_type = #tpu.core_type<tc>, window_params = [{transform_indices = @transform_0, window_bounds = array<i64: 128, 128>}, {transform_indices = @transform_1, window_bounds = array<i64: 128, 128>}, {transform_indices = @transform_2, window_bounds = array<i64: 1, 128>}, {transform_indices = @transform_3, window_bounds = array<i64: 128, 128>}]} {
    %c0_i32 = arith.constant 0 : i32
    %0 = arith.cmpi eq, %arg2, %c0_i32 : i32
    %1 = arith.extui %0 : i1 to i32
    %c0_i32_0 = arith.constant 0 : i32
    %2 = arith.cmpi ne, %1, %c0_i32_0 : i32
    scf.if %2 {
      %cst_10 = arith.constant 0.000000e+00 : f32
      %12 = vector.broadcast %cst_10 : f32 to vector<128x128xf32>
      %c0_11 = arith.constant 0 : index
      %c0_12 = arith.constant 0 : index
      %13 = vector.load %arg7[%c0_11, %c0_12] : memref<128x128xf32, #tpu.memory_space<vmem>>, vector<128x128xf32>
      tpu.vector_store %arg7[%c0_11, %c0_12], %12 {strides = array<i32>} : memref<128x128xf32, #tpu.memory_space<vmem>>, vector<128x128xf32>,
    } else {
    }
    %c0 = arith.constant 0 : index
    %c0_1 = arith.constant 0 : index
    %3 = vector.load %arg7[%c0, %c0_1] : memref<128x128xf32, #tpu.memory_space<vmem>>, vector<128x128xf32>
    %c0_2 = arith.constant 0 : index
    %c0_3 = arith.constant 0 : index
    %4 = vector.load %arg3[%c0_2, %c0_3] : memref<128x128xbf16, #tpu.memory_space<vmem>>, vector<128x128xbf16>
    %c0_4 = arith.constant 0 : index
    %c0_5 = arith.constant 0 : index
    %5 = vector.load %arg4[%c0_4, %c0_5] : memref<128x128xbf16, #tpu.memory_space<vmem>>, vector<128x128xbf16>
    %cst = arith.constant dense<0.000000e+00> : vector<128x128xf32>
    %6 = tpu.matmul %4, %5, %cst {dimension_numbers = #tpu.dot_dimension_numbers<[1], [0], [0], [1], [0, 0, 1, 1], [], []>} : vector<128x128xbf16>, vector<128x128xbf16>, vector<128x128xf32> -> vector<128x128xf32>
    %7 = arith.addf %3, %6 : vector<128x128xf32>
    %c0_6 = arith.constant 0 : index
    %c0_7 = arith.constant 0 : index
    %8 = vector.load %arg7[%c0_6, %c0_7] : memref<128x128xf32, #tpu.memory_space<vmem>>, vector<128x128xf32>
    tpu.vector_store %arg7[%c0_6, %c0_7], %7 {strides = array<i32>} : memref<128x128xf32, #tpu.memory_space<vmem>>, vector<128x128xf32>,
    %c0_i32_8 = arith.constant 0 : i32
    %9 = arith.cmpi eq, %arg2, %c0_i32_8 : i32
    %10 = arith.extui %9 : i1 to i32
    %c0_i32_9 = arith.constant 0 : i32
    %11 = arith.cmpi ne, %10, %c0_i32_9 : i32
    scf.if %11 {
      %c0_10 = arith.constant 0 : index
      %c0_11 = arith.constant 0 : index
      %12 = vector.load %arg7[%c0_10, %c0_11] : memref<128x128xf32, #tpu.memory_space<vmem>>, vector<128x128xf32>
      %c0_12 = arith.constant 0 : index
      %c0_13 = arith.constant 0 : index
      %13 = vector.load %arg5[%c0_12, %c0_13] : memref<1x128xf32, #tpu.memory_space<vmem>>, vector<1x128xf32>
      %14 = vector.broadcast %13 : vector<1x128xf32> to vector<128x128xf32>
      %15 = arith.addf %12, %14 : vector<128x128xf32>
      %16 = arith.truncf %15 : vector<128x128xf32> to vector<128x128xbf16>
      %c0_14 = arith.constant 0 : index
      %c0_15 = arith.constant 0 : index
      %17 = vector.load %arg6[%c0_14, %c0_15] : memref<128x128xbf16, #tpu.memory_space<vmem>>, vector<128x128xbf16>
      tpu.vector_store %arg6[%c0_14, %c0_15], %16 {strides = array<i32>} : memref<128x128xbf16, #tpu.memory_space<vmem>>, vector<128x128xbf16>,
    } else {
    }
    return
  }
  func.func @transform_0(%arg0: i32, %arg1: i32, %arg2: i32) -> (i32, i32) {
    %c0_i32 = arith.constant 0 : i32
    return %arg0, %arg2 : i32, i32
  }
  func.func @transform_1(%arg0: i32, %arg1: i32, %arg2: i32) -> (i32, i32) {
    %c0_i32 = arith.constant 0 : i32
    return %arg2, %arg1 : i32, i32
  }
  func.func @transform_2(%arg0: i32, %arg1: i32, %arg2: i32) -> (i32, i32) {
    %c0_i32 = arith.constant 0 : i32
    %c0_i32_0 = arith.constant 0 : i32
    return %c0_i32, %arg1 : i32, i32
  }
  func.func @transform_3(%arg0: i32, %arg1: i32, %arg2: i32) -> (i32, i32) {
    %c0_i32 = arith.constant 0 : i32
    return %arg0, %arg1 : i32, i32
  }
}

</mosaic_0001>

<bundles_post_ra>
// kernel: tpu_custom_call.1
= control target key start
LH: loop header
LB: loop body
LE: loop exit
PB: predicated region body
PF: predicated region fallthrough
CT: control target
= control target key end

     0   :  { %8 = vsyncpa [#allocation4], 0  ;;  %s664_s0 = inlined_call_operand.hbm [shape: bf16[128,128], index: 0, kind: input, shape index: {}]   ;;  %s665_s1 = inlined_call_operand.hbm [shape: bf16[128,128], index: 1, kind: input, shape index: {}]   ;;  %s666_s2 = inlined_call_operand.vmem [shape: f32[1,128], index: 2, kind: input, shape index: {}]   ;;  %s667_s3 = inlined_call_operand.hbm [shape: bf16[128,128], index: 3, kind: output, shape index: {}]  }
   0x1   :  { %9 = vsyncpa [#allocation7], 0 }
   0x2   :  { %10 = vsyncpa [#allocation5], 0  ;;  %s15_s14 = sshll.u32 %s664_s0, 4  ;;  %s618_s15 = smov [#allocation3]   ;;  %s16_s14 = int_to_ptr.hbm [resolvable:$true] %s15_s14 }
   0x3   :  { %s17_s16 = sshll.u32 %s618_s15, 4  ;;  %s28_s19 = sshll.u32 %s665_s1, 4  ;;  %s18_s16 = int_to_ptr.vmem [resolvable:$true] %s17_s16  ;;  %s29_s19 = int_to_ptr.hbm [resolvable:$true] %s28_s19 }
   0x4   :  { %s619_s20 = smov 64   ;;  %s620_s21 = smov 4  }
   0x5   :  { %23 = dma.hbm_to_vmem [thread:$0]  %s16_s14, 1024, %s18_s16, [#allocation4], %s619_s20, %s619_s20, %s620_s21  }
   0x6   :  { %s621_s22 = smov [#allocation6]  }
   0x7   :  { %s30_s23 = sshll.u32 %s621_s22, 4  ;;  %s31_s23 = int_to_ptr.vmem [resolvable:$true] %s30_s23 }
   0x8   :  { %36 = dma.hbm_to_vmem [thread:$0]  %s29_s19, 1024, %s31_s23, [#allocation7], %s619_s20, %s619_s20, %s620_s21  }
   0x9   :  { %612 = dma.done.wait [#allocation4], 1024  }
   0xa   :  { %613 = vsyncadd [#allocation4], 4294966272 }
   0xb   :  { %614 = dma.done.wait [#allocation7], 1024  }
   0xc   :  { %615 = vsyncadd [#allocation7], 4294966272  ;;  %v462_v0 = vld [vmem:[#allocation6 + $0x38] sm:$0xff]  ;;  %v461_v1 = vld [vmem:[#allocation6 + $0x30] sm:$0xff]  ;;  %s369_s27 = sshll.u32 %s667_s3, 4  ;;  %s370_s27 = int_to_ptr.hbm [resolvable:$true] %s369_s27 }
   0xd   :  { %211 = vmatpush.bf16.msra.mxu0 %v462_v0  ;;  %510 = vmatpush.bf16.msra.mxu1 %v462_v0  ;;  %v460_v2 = vld [vmem:[#allocation6 + $0x28] sm:$0xff]  ;;  %v459_v3 = vld [vmem:[#allocation6 + $0x20] sm:$0xff]  ;;  %v458_v4 = vld [vmem:[#allocation6 + $0x18] sm:$0xff] }
   0xe   :  { %511 = vmatpush.bf16.msra.mxu2 %v462_v0  ;;  %512 = vmatpush.bf16.msra.mxu3 %v462_v0  ;;  %v457_v5 = vld [vmem:[#allocation6 + $0x10] sm:$0xff]  ;;  %v456_v6 = vld [vmem:[#allocation6 + $0x8] sm:$0xff]  ;;  %v455_v7 = vld [vmem:[#allocation6] sm:$0xff] }
   0xf   :  { %v447_v8 = vld [vmem:[#allocation3] sm:$0xff]  ;;  %v449_v9 = vld [vmem:[#allocation3 + $0x10] sm:$0xff]  ;;  %v448_v12 = vld [vmem:[#allocation3 + $0x8] sm:$0xff] }
  0x10   :  { %v451_v10 = vld [vmem:[#allocation3 + $0x20] sm:$0xff]  ;;  %v453_v11 = vld [vmem:[#allocation3 + $0x30] sm:$0xff]  ;;  %v450_v13 = vld [vmem:[#allocation3 + $0x18] sm:$0xff] }
  0x11   :  { %212 = vmatpush.bf16.msra.mxu0 %v461_v1  ;;  %513 = vmatpush.bf16.msra.mxu1 %v461_v1  ;;  %v452_v14 = vld [vmem:[#allocation3 + $0x28] sm:$0xff]  ;;  %v454_v15 = vld [vmem:[#allocation3 + $0x38] sm:$0xff]  ;;  %v539_v18 = vld [vmem:[%s666_s2] ss:$0 sm:$0xff]  ;;  %s622_s2 = smov [#allocation8]  }
  0x12   :  { %514 = vmatpush.bf16.msra.mxu2 %v461_v1  ;;  %515 = vmatpush.bf16.msra.mxu3 %v461_v1  ;;  %s367_s24 = sshll.u32 %s622_s2, 4  ;;  %s368_s24 = int_to_ptr.vmem [resolvable:$true] %s367_s24 }
  0x15   :  { %213 = vmatpush.bf16.msra.mxu0 %v460_v2  ;;  %516 = vmatpush.bf16.msra.mxu1 %v460_v2 }
  0x16   :  { %517 = vmatpush.bf16.msra.mxu2 %v460_v2  ;;  %518 = vmatpush.bf16.msra.mxu3 %v460_v2 }
  0x19   :  { %214 = vmatpush.bf16.msra.mxu0 %v459_v3  ;;  %519 = vmatpush.bf16.msra.mxu1 %v459_v3 }
  0x1a   :  { %520 = vmatpush.bf16.msra.mxu2 %v459_v3  ;;  %521 = vmatpush.bf16.msra.mxu3 %v459_v3 }
  0x1d   :  { %215 = vmatpush.bf16.msra.mxu0 %v458_v4  ;;  %522 = vmatpush.bf16.msra.mxu1 %v458_v4 }
  0x1e   :  { %523 = vmatpush.bf16.msra.mxu2 %v458_v4  ;;  %524 = vmatpush.bf16.msra.mxu3 %v458_v4 }
  0x21   :  { %216 = vmatpush.bf16.msra.mxu0 %v457_v5  ;;  %525 = vmatpush.bf16.msra.mxu1 %v457_v5 }
  0x22   :  { %526 = vmatpush.bf16.msra.mxu2 %v457_v5  ;;  %527 = vmatpush.bf16.msra.mxu3 %v457_v5 }
  0x25   :  { %217 = vmatpush.bf16.msra.mxu0 %v456_v6  ;;  %528 = vmatpush.bf16.msra.mxu1 %v456_v6 }
  0x26   :  { %529 = vmatpush.bf16.msra.mxu2 %v456_v6  ;;  %530 = vmatpush.bf16.msra.mxu3 %v456_v6 }
  0x29   :  { %218 = vmatpush.bf16.msra.mxu0 %v455_v7  ;;  %531 = vmatpush.bf16.msra.mxu1 %v455_v7 }
  0x2a   :  { %532 = vmatpush.bf16.msra.mxu2 %v455_v7  ;;  %533 = vmatpush.bf16.msra.mxu3 %v455_v7 }
  0x2c   :  { %219 = vmatmul.bf16.vlgmr.msra.gmra.mxu0 %v447_v8  ;;  %229 = vmatmul.bf16.vlgmr.msra.gmra.mxu1 %v449_v9 }
  0x2d   :  { %239 = vmatmul.bf16.vlgmr.msra.gmra.mxu2 %v451_v10  ;;  %249 = vmatmul.bf16.vlgmr.msra.gmra.mxu3 %v453_v11 }
  0x3c   :  { %224 = vmatmul.bf16.gmra.mxu0 %v448_v12  ;;  %234 = vmatmul.bf16.gmra.mxu1 %v450_v13 }
  0x3d   :  { %244 = vmatmul.bf16.gmra.mxu2 %v452_v14  ;;  %254 = vmatmul.bf16.gmra.mxu3 %v454_v15 }
  0xa9   :  { %v220_v16 = vpop.f32.mrf.mxu0  ;;  %v230_v17 = vpop.f32.mrf.mxu1 }
  0xaa   :  { %v315_v23 = vadd.f32 %v539_v18, %v220_v16  ;;  %v319_v24 = vadd.f32 %v539_v18, %v230_v17 }
  0xb0   :  { %v240_v19 = vpop.f32.mrf.mxu2  ;;  %v250_v20 = vpop.f32.mrf.mxu3 }
  0xb1   :  { %v222_v21 = vpop.f32.mrf.mxu0  ;;  %v232_v22 = vpop.f32.mrf.mxu1  ;;  %v323_v31 = vadd.f32 %v539_v18, %v240_v19  ;;  %v327_v32 = vadd.f32 %v539_v18, %v250_v20 }
  0xb2   :  { %v316_v25 = vadd.f32 %v539_v18, %v222_v21  ;;  %v320_v26 = vadd.f32 %v539_v18, %v232_v22 }
  0xb4   :  { %v466_v27 = vpack.c.bf16 %v316_v25, %v315_v23  ;;  %v476_v28 = vpack.c.bf16 %v320_v26, %v319_v24 }
  0xb6   :  { %467 = vst [vmem:[#allocation8] sm:$0xff] %v466_v27  }
  0xb7   :  { %504 = vst [vmem:[#allocation8 + $0x10] sm:$0xff] %v476_v28  }
  0xb8   :  { %v242_v29 = vpop.f32.mrf.mxu2  ;;  %v252_v30 = vpop.f32.mrf.mxu3 }
  0xb9   :  { %v324_v33 = vadd.f32 %v539_v18, %v242_v29  ;;  %v328_v34 = vadd.f32 %v539_v18, %v252_v30  ;;  %v225_v35 = vpop.f32.mrf.mxu0  ;;  %v235_v36 = vpop.f32.mrf.mxu1 }
  0xba   :  { %v317_v43 = vadd.f32 %v539_v18, %v225_v35  ;;  %v321_v44 = vadd.f32 %v539_v18, %v235_v36 }
  0xbb   :  { %v486_v37 = vpack.c.bf16 %v324_v33, %v323_v31  ;;  %v496_v38 = vpack.c.bf16 %v328_v34, %v327_v32 }
  0xbd   :  { %506 = vst [vmem:[#allocation8 + $0x20] sm:$0xff] %v486_v37  }
  0xbe   :  { %508 = vst [vmem:[#allocation8 + $0x30] sm:$0xff] %v496_v38  }
  0xc0   :  { %v245_v39 = vpop.f32.mrf.mxu2  ;;  %v255_v40 = vpop.f32.mrf.mxu3 }
  0xc1   :  { %v227_v41 = vpop.f32.mrf.mxu0  ;;  %v237_v42 = vpop.f32.mrf.mxu1  ;;  %v325_v51 = vadd.f32 %v539_v18, %v245_v39  ;;  %v329_v52 = vadd.f32 %v539_v18, %v255_v40 }
  0xc2   :  { %v318_v45 = vadd.f32 %v539_v18, %v227_v41  ;;  %v322_v46 = vadd.f32 %v539_v18, %v237_v42 }
  0xc4   :  { %v471_v47 = vpack.c.bf16 %v318_v45, %v317_v43  ;;  %v481_v48 = vpack.c.bf16 %v322_v46, %v321_v44 }
  0xc6   :  { %503 = vst [vmem:[#allocation8 + $0x8] sm:$0xff] %v471_v47  }
  0xc7   :  { %505 = vst [vmem:[#allocation8 + $0x18] sm:$0xff] %v481_v48  }
  0xc8   :  { %v247_v49 = vpop.f32.mrf.mxu2  ;;  %v257_v50 = vpop.f32.mrf.mxu3 }
  0xc9   :  { %v326_v53 = vadd.f32 %v539_v18, %v247_v49  ;;  %v330_v54 = vadd.f32 %v539_v18, %v257_v50 }
  0xcb   :  { %v491_v55 = vpack.c.bf16 %v326_v53, %v325_v51  ;;  %v501_v56 = vpack.c.bf16 %v330_v54, %v329_v52 }
  0xcd   :  { %507 = vst [vmem:[#allocation8 + $0x28] sm:$0xff] %v491_v55  }
  0xce   :  { %509 = vst [vmem:[#allocation8 + $0x38] sm:$0xff] %v501_v56  }
  0xcf   :  { %375 = dma.vmem_to_hbm [thread:$0]  %s368_s24, 1024, %s370_s27, [#allocation5], %s619_s20, %s619_s20, %s620_s21  }
  0xd0   :  { %616 = dma.done.wait [#allocation5], 1024  }
  0xd1   :  { %617 = vsyncadd [#allocation5], 4294966272 }
  0xd2   :  { %380 = vsyncpa [#allocation4], 1 }
  0xd3   :  { %381 = vsyncpa [#allocation7], 1 }
  0xd4   :  { %382 = vsyncpa [#allocation5], 1 }

</bundles_post_ra>
